<compile_context>
chip_gen: v6e
topology: v6e:2x2x1
jax: 0.10.0
libtpu: 0.0.40
codegen_flags: <defaults>
</compile_context>

<pallas_src>
import functools

import jax
import jax.numpy as jnp
from jax.experimental import pallas as pl
from jax.experimental.pallas import tpu as pltpu

_EPS_NUM = 1e-8
_TARGET_BLOCK_ELEMS = 512 * 1024   # ~2 MiB of f32 per input block
_MIN_GRID_STEPS = 8                # keep pipelining + megacore split alive
_TAIL_ELEMS = 8 * 128              # padded tail slab: one (8,128) tile


# ---------------------------------------------------------------------------
# Kernels
# ---------------------------------------------------------------------------
def _train_kernel_hw_prng(seed_ref, x_ref, o_ref, *, eps_num):
    """Training path, TPU hardware PRNG (no extra HBM read for noise)."""
    # seed_ref = [base_seed, block_offset]; every grid step (and the tail
    # launch, via block_offset) draws independent noise.
    pltpu.prng_seed(seed_ref[0], seed_ref[1] + pl.program_id(0))
    bits = pltpu.bitcast(pltpu.prng_random_bits(x_ref.shape), jnp.uint32)
    # uniform in [0, 1): 23 random bits into the mantissa of [1, 2), subtract 1.
    u = pltpu.bitcast((bits >> jnp.uint32(9)) | jnp.uint32(0x3F800000),
                      jnp.float32) - 1.0
    x = x_ref[...].astype(jnp.float32)
    # Forward value of the straight-through sample (single EUP op):
    #   x + log(u+eps) - log(1-u+eps) >= 0  <=>  (u+eps)*exp(x) >= (1-u+eps)
    o_ref[...] = ((u + eps_num) * jnp.exp(x)
                  >= (1.0 - u + eps_num)).astype(o_ref.dtype)


def _train_kernel_ext_uniform(x_ref, u_ref, o_ref, *, eps_num):
    """Training path, uniform noise supplied from the host (portable fallback)."""
    x = x_ref[...].astype(jnp.float32)
    u = u_ref[...]
    o_ref[...] = ((u + eps_num) * jnp.exp(x)
                  >= (1.0 - u + eps_num)).astype(o_ref.dtype)


def _eval_kernel(x_ref, o_ref):
    o_ref[...] = (x_ref[...].astype(jnp.float32) >= 0.0).astype(o_ref.dtype)


# ---------------------------------------------------------------------------
# Planning helpers
# ---------------------------------------------------------------------------
def _plan_layout(n):
    """Return (W, n_main): lane width and bulk element count (multiple of W)."""
    for w in (1024, 512, 256, 128):
        if n % w == 0:
            return w, n
    w = 1024 if n >= 1024 else 128
    return w, (n // w) * w


def _plan_blocks(rows, w):
    """Block rows: ~2 MiB per block, but >= ~8 grid steps whenever rows > 8."""
    max_block_rows = max(8, (_TARGET_BLOCK_ELEMS // w) // 8 * 8)
    if rows <= 8:
        block_rows = rows                              # single tiny block
    else:
        target = max(8, pl.cdiv(rows, _MIN_GRID_STEPS))
        target = pl.cdiv(target, 8) * 8                # sublane multiple of 8
        block_rows = min(max_block_rows, target)
    return block_rows, (pl.cdiv(rows, block_rows),)    # ragged last block masked


def _launch(x2d, block_rows, grid, *, training, seed, block_offset, on_tpu,
            noise_key):
    """Run the appropriate kernel over a lane-dense 2-D slab."""
    rows, w = x2d.shape
    out_shape = jax.ShapeDtypeStruct((rows, w), x2d.dtype)
    blk = pl.BlockSpec((block_rows, w), lambda i: (i, 0))
    cparams = (pltpu.CompilerParams(dimension_semantics=("parallel",),
                                    vmem_limit_bytes=32 << 20)
               if on_tpu else None)
    # If xprof ever shows exposed DMA here, add pipeline_mode=pl.Buffered(3)
    # on the input BlockSpec.

    if not training:
        return pl.pallas_call(
            _eval_kernel, out_shape=out_shape, grid=grid,
            in_specs=[blk], out_specs=blk, compiler_params=cparams,
        )(x2d)

    if on_tpu:
        seed_arr = jnp.asarray([seed, block_offset], dtype=jnp.int32)
        kernel = functools.partial(_train_kernel_hw_prng, eps_num=_EPS_NUM)
        return pl.pallas_call(
            kernel, out_shape=out_shape,
            grid_spec=pltpu.PrefetchScalarGridSpec(
                num_scalar_prefetch=1, grid=grid,
                in_specs=[pl.BlockSpec((block_rows, w), lambda i, s: (i, 0))],
                out_specs=pl.BlockSpec((block_rows, w), lambda i, s: (i, 0))),
            compiler_params=cparams,
        )(seed_arr, x2d)

    # Non-TPU backend (e.g. CPU interpret tests): the hardware PRNG primitives
    # have no lowering, so draw the uniform noise with jax.random and pass it in.
    u2d = jax.random.uniform(noise_key, (rows, w), dtype=jnp.float32)
    kernel = functools.partial(_train_kernel_ext_uniform, eps_num=_EPS_NUM)
    return pl.pallas_call(
        kernel, out_shape=out_shape, grid=grid,
        in_specs=[blk, blk], out_specs=blk, compiler_params=cparams,
    )(x2d, u2d)


# ---------------------------------------------------------------------------
# Wrapper
# ---------------------------------------------------------------------------
def gumbel_softmax_forward(logits, *, training=True, eps=1.0, seed=0):
    """Elementwise Gumbel-sigmoid gate; 0/1 values in the INPUT dtype.

    Noise is fully determined by (seed, block position): advance `seed` between
    calls to get fresh samples (unlike PyTorch's global RNG state).
    """
    assert eps > 0, "temperature eps must be > 0"
    orig_shape = logits.shape
    n = logits.size

    W, n_main = _plan_layout(n)
    rem = n - n_main
    x_flat = logits.reshape(-1)
    on_tpu = jax.default_backend() == "tpu"
    base_key = jax.random.PRNGKey(seed) if (training and not on_tpu) else None

    pieces = []
    main_blocks = 0
    if n_main:
        rows = n_main // W
        block_rows, grid = _plan_blocks(rows, W)
        main_blocks = grid[0]
        x2d = (x_flat if rem == 0 else x_flat[:n_main]).reshape(rows, W)
        out2d = _launch(
            x2d, block_rows, grid, training=training, seed=seed,
            block_offset=0, on_tpu=on_tpu,
            noise_key=None if base_key is None else jax.random.fold_in(base_key, 0))
        pieces.append(out2d.reshape(-1))

    if rem:
        # <= 1023-element tail: pad to a single (8,128) tile and run a tiny
        # second call (negligible cost) instead of padding the whole array.
        tail = jnp.pad(x_flat[n_main:], (0, _TAIL_ELEMS - rem)).reshape(8, 128)
        tail_out = _launch(
            tail, 8, (1,), training=training, seed=seed,
            block_offset=main_blocks, on_tpu=on_tpu,
            noise_key=None if base_key is None else jax.random.fold_in(base_key, 1))
        pieces.append(tail_out.reshape(-1)[:rem])

    out_flat = pieces[0] if len(pieces) == 1 else jnp.concatenate(pieces)
    return out_flat.reshape(orig_shape)


# ---------------------------------------------------------------------------
# Self-test
# ---------------------------------------------------------------------------
if __name__ == "__main__":
    key = jax.random.PRNGKey(0)
    k1, k2 = jax.random.split(key)

    # NCHW conv-style activations feeding this gate (lane-aligned fast path).
    x = jax.random.normal(k1, (2, 4, 16, 16), dtype=jnp.float32)
    out_train = gumbel_softmax_forward(x, training=True, eps=1.0, seed=0)
    out_eval = gumbel_softmax_forward(x, training=False)

    # Ragged size + bf16 input (exercises bulk + tail path and dtype handling).
    y = jax.random.normal(k2, (5, 25, 25), dtype=jnp.bfloat16)   # 3125 elements
    y_train = gumbel_softmax_forward(y, training=True, eps=1.0, seed=1)
    y_eval = gumbel_softmax_forward(y, training=False)

    jax.block_until_ready((out_train, out_eval, y_train, y_eval))

    assert out_train.shape == x.shape and out_train.dtype == x.dtype
    assert out_eval.shape == x.shape and out_eval.dtype == x.dtype
    assert y_train.shape == y.shape and y_train.dtype == y.dtype
    assert y_eval.shape == y.shape and y_eval.dtype == y.dtype
    # training forward value is a hard 0/1 sample (straight-through)
    assert bool(jnp.all((out_train == 0.0) | (out_train == 1.0)))
    assert bool(jnp.all((y_train == 0.0) | (y_train == 1.0)))
    # since P(on) = sigmoid(logit) and logits ~ N(0,1), mean gate rate is ~0.5
    rate = float(jnp.mean(out_train))
    assert 0.25 < rate < 0.75, f"unexpected gate rate {rate}"
    # eval path is exactly (logits >= 0)
    assert bool(jnp.all(out_eval == (x >= 0).astype(x.dtype)))
    assert bool(jnp.all(y_eval == (y >= 0).astype(y.dtype)))

    print("KERNEL_OK")
</pallas_src>

<mosaic_0001>
module attributes {stable_mosaic.version = 11 : i64} {
  func.func @_train_kernel_ext_uniform(%arg0: i32, %arg1: memref<2x1024xf32, #tpu.memory_space<vmem>>, %arg2: memref<2x1024xf32, #tpu.memory_space<vmem>>, %arg3: memref<2x1024xf32, #tpu.memory_space<vmem>>) attributes {dimension_semantics = [#tpu.dimension_semantics<arbitrary>], iteration_bounds = array<i64: 1>, scalar_prefetch = 0 : i64, scratch_operands = 0 : i64, tpu.core_type = #tpu.core_type<tc>, window_params = [{transform_indices = @transform_0, window_bounds = array<i64: 2, 1024>}, {transform_indices = @transform_1, window_bounds = array<i64: 2, 1024>}, {transform_indices = @transform_2, window_bounds = array<i64: 2, 1024>}]} {
    %c0 = arith.constant 0 : index
    %c0_0 = arith.constant 0 : index
    %0 = vector.load %arg1[%c0, %c0_0] : memref<2x1024xf32, #tpu.memory_space<vmem>>, vector<2x1024xf32>
    %c0_1 = arith.constant 0 : index
    %c0_2 = arith.constant 0 : index
    %1 = vector.load %arg2[%c0_1, %c0_2] : memref<2x1024xf32, #tpu.memory_space<vmem>>, vector<2x1024xf32>
    %cst = arith.constant 9.99999993E-9 : f32
    %2 = vector.broadcast %cst : f32 to vector<2x1024xf32>
    %3 = arith.addf %1, %2 : vector<2x1024xf32>
    %4 = math.exp %0 : vector<2x1024xf32>
    %5 = arith.mulf %3, %4 : vector<2x1024xf32>
    %cst_3 = arith.constant 1.000000e+00 : f32
    %6 = vector.broadcast %cst_3 : f32 to vector<2x1024xf32>
    %7 = arith.subf %6, %1 : vector<2x1024xf32>
    %cst_4 = arith.constant 9.99999993E-9 : f32
    %8 = vector.broadcast %cst_4 : f32 to vector<2x1024xf32>
    %9 = arith.addf %7, %8 : vector<2x1024xf32>
    %10 = arith.cmpf oge, %5, %9 : vector<2x1024xf32>
    %11 = arith.extui %10 : vector<2x1024xi1> to vector<2x1024xi32>
    %12 = arith.sitofp %11 : vector<2x1024xi32> to vector<2x1024xf32>
    %c0_5 = arith.constant 0 : index
    %c0_6 = arith.constant 0 : index
    %13 = vector.load %arg3[%c0_5, %c0_6] : memref<2x1024xf32, #tpu.memory_space<vmem>>, vector<2x1024xf32>
    tpu.vector_store %arg3[%c0_5, %c0_6], %12 {strides = array<i32>} : memref<2x1024xf32, #tpu.memory_space<vmem>>, vector<2x1024xf32>,
    return
  }
  func.func @transform_0(%arg0: i32) -> (i32, i32) {
    %c0_i32 = arith.constant 0 : i32
    %c0_i32_0 = arith.constant 0 : i32
    return %arg0, %c0_i32 : i32, i32
  }
  func.func @transform_1(%arg0: i32) -> (i32, i32) {
    %c0_i32 = arith.constant 0 : i32
    %c0_i32_0 = arith.constant 0 : i32
    return %arg0, %c0_i32 : i32, i32
  }
  func.func @transform_2(%arg0: i32) -> (i32, i32) {
    %c0_i32 = arith.constant 0 : i32
    %c0_i32_0 = arith.constant 0 : i32
    return %arg0, %c0_i32 : i32, i32
  }
}

</mosaic_0001>

<bundles_post_ra>
// kernel: tpu_custom_call.1
= control target key start
LH: loop header
LB: loop body
LE: loop exit
PB: predicated region body
PF: predicated region fallthrough
CT: control target
= control target key end

     0   :  { %7 = vsyncpa [#allocation3], 0  ;;  %s180_s0 = inlined_call_operand.hbm [shape: f32[2,1024], index: 0, kind: input, shape index: {}]   ;;  %s181_s1 = inlined_call_operand.hbm [shape: f32[2,1024], index: 1, kind: input, shape index: {}]   ;;  %s182_s2 = inlined_call_operand.hbm [shape: f32[2,1024], index: 2, kind: output, shape index: {}]  }
   0x1   :  { %8 = vsyncpa [#allocation6], 0 }
   0x2   :  { %9 = vsyncpa [#allocation4], 0  ;;  %s152_s9 = smov [#allocation2]   ;;  %s153_s11 = smov [#allocation5]  }
   0x3   :  { %s16_s10 = sshll.u32 %s152_s9, 4  ;;  %s26_s12 = sshll.u32 %s153_s11, 4  ;;  %s17_s10 = int_to_ptr.vmem [resolvable:$true] %s16_s10  ;;  %s27_s12 = int_to_ptr.vmem [resolvable:$true] %s26_s12 }
   0x4   :  { %s94_s13 = scalar_lea.vmem %s17_s10, 256  ;;  %p99_p1 = scmp.lt.s32.totalorder %s17_s10, %s17_s10 }
   0x5   :  { %p95_p0 = scmp.ne.s32.totalorder %s17_s10, %s94_s13  ;;  %p100_p2 = scmp.lt.s32.totalorder %s94_s13, %s94_s13 }
   0x7   :  { %p101_p3 = por %p100_p2, %p99_p1 }
   0x9   :  { %p102_p4 = pnand %p101_p3, %p95_p0 }
   0xb   :  { %105 = shalt.err (!%p102_p4)
}
   0xc   :  { %19 = dma.hbm_to_vmem [thread:$0]  %s180_s0, 256, %s17_s10, [#allocation3]  }
   0xd   :  { %s114_s16 = scalar_lea.vmem %s27_s12, 256  ;;  %p119_p6 = scmp.lt.s32.totalorder %s27_s12, %s27_s12 }
   0xe   :  { %p115_p5 = scmp.ne.s32.totalorder %s27_s12, %s114_s16  ;;  %p120_p7 = scmp.lt.s32.totalorder %s114_s16, %s114_s16 }
  0x10   :  { %p121_p8 = por %p120_p7, %p119_p6 }
  0x12   :  { %p122_p9 = pnand %p121_p8, %p115_p5 }
  0x14   :  { %125 = shalt.err (!%p122_p9)
}
  0x15   :  { %29 = dma.hbm_to_vmem [thread:$0]  %s181_s1, 256, %s27_s12, [#allocation6]  }
  0x16   :  { %146 = dma.done.wait [#allocation3], 256  }
  0x17   :  { %147 = vsyncadd [#allocation3], 4294967040 }
  0x18   :  { %148 = dma.done.wait [#allocation6], 256  }
  0x19   :  { %149 = vsyncadd [#allocation6], 4294967040  ;;  %v36_v0 = vld [vmem:[#allocation2] sm:$0xff]  ;;  %v37_v1 = vld [vmem:[#allocation2 + $0x8] sm:$0xff]  ;;  %s154_s0 = smov [#allocation7]   ;;  %v155_v16 = vmov 0.0  }
  0x1a   :  { %v42_v2 = vmul.f32 1.442695, %v36_v0  ;;  %v44_v3 = vmul.f32 1.442695, %v37_v1  ;;  %v38_v4 = vld [vmem:[#allocation5] sm:$0xff]  ;;  %v39_v5 = vld [vmem:[#allocation5 + $0x8] sm:$0xff] }
  0x1b   :  { %v48_v6 = vsub.f32 1.0, %v38_v4  ;;  %v49_v7 = vsub.f32 1.0, %v39_v5  ;;  %v40_v8 = vadd.f32 1e-08, %v38_v4  ;;  %v41_v9 = vadd.f32 1e-08, %v39_v5 }
  0x1c   :  { %82 = vpow2.f32 %v42_v2  ;;  %s66_s1 = sshll.u32 %s154_s0, 4  ;;  %s67_s1 = int_to_ptr.vmem [resolvable:$true] %s66_s1 }
  0x1d   :  { %84 = vpow2.f32 %v44_v3  ;;  %v50_v10 = vadd.f32 1e-08, %v48_v6  ;;  %v51_v12 = vadd.f32 1e-08, %v49_v7  ;;  %s126_s19 = scalar_lea.vmem %s67_s1, 256  ;;  %p131_p11 = scmp.lt.s32.totalorder %s67_s1, %s67_s1 }
  0x1e   :  { %p127_p10 = scmp.ne.s32.totalorder %s67_s1, %s126_s19  ;;  %p132_p12 = scmp.lt.s32.totalorder %s126_s19, %s126_s19 }
  0x20   :  { %p133_p13 = por %p132_p12, %p131_p11 }
  0x22   :  { %p134_p0 = pnand %p133_p13, %p127_p10 }
  0x29   :  { %v83_v11 = vpop.eup %82 }
  0x2a   :  { %v85_v13 = vpop.eup %84  ;;  %v46_v14 = vmul.f32 %v83_v11, %v40_v8 }
  0x2b   :  { %v47_v15 = vmul.f32 %v85_v13, %v41_v9 }
  0x2c   :  { %vm52_vm0 = vcmp.ge.f32.partialorder %v46_v14, %v50_v10 }
  0x2d   :  { %v76_v17 = vsel %vm52_vm0, 1.0, %v155_v16  ;;  %vm53_vm1 = vcmp.ge.f32.partialorder %v47_v15, %v51_v12 }
  0x2e   :  { %58 = vst [vmem:[#allocation7] sm:$0xff] %v76_v17  ;;  %v77_v18 = vsel %vm53_vm1, 1.0, %v155_v16 }
  0x2f   :  { %59 = vst [vmem:[#allocation7 + $0x8] sm:$0xff] %v77_v18 }
  0x30   :  { %137 = shalt.err (!%p134_p0)
}
  0x31   :  { %69 = dma.vmem_to_hbm [thread:$0]  %s67_s1, 256, %s182_s2, [#allocation4]  }
  0x32   :  { %150 = dma.done.wait [#allocation4], 256  }
  0x33   :  { %151 = vsyncadd [#allocation4], 4294967040 }
  0x34   :  { %73 = vsyncpa [#allocation3], 1 }
  0x35   :  { %74 = vsyncpa [#allocation6], 1 }
  0x36   :  { %75 = vsyncpa [#allocation4], 1 }

</bundles_post_ra>
